<compile_context>
chip_gen: v6e
topology: v6e:2x2x1
jax: 0.10.0
libtpu: 0.0.40
codegen_flags: <defaults>
</compile_context>

<pallas_src>
import numpy as np
import jax
import jax.numpy as jnp
from jax.experimental import pallas as pl
from jax.experimental.pallas import tpu as pltpu


def _round_up(x, m):
    return ((x + m - 1) // m) * m


def actor_kernel(x_ref, w1_ref, b1_ref, w2_ref, b2_ref, w3_ref, b3_ref, out_ref):
    # Weights are bf16 (half the DMA bytes); all accumulation / elementwise math is f32.
    x = x_ref[...].astype(jnp.bfloat16)
    h1 = jnp.dot(x, w1_ref[...], preferred_element_type=jnp.float32)
    h1 = jnp.maximum(h1 + b1_ref[...], 0.0)
    h2 = jnp.dot(h1.astype(jnp.bfloat16), w2_ref[...], preferred_element_type=jnp.float32)
    h2 = jnp.maximum(h2 + b2_ref[...], 0.0)
    o = jnp.dot(h2.astype(jnp.bfloat16), w3_ref[...], preferred_element_type=jnp.float32)
    out_ref[...] = jnp.tanh(o + b3_ref[...])


def actor_forward(x, packed_params, out_size):
    """x: [B, input_size] float32.
    packed_params: padded/bf16 params from pack_actor_params().
    out_size: logical action dimension (output is sliced back to this width)."""
    w1, b1, w2, b2, w3, b3 = packed_params
    B, f_in = x.shape
    out_pad = w3.shape[1]

    # Batch tile: single grid step for typical RL batches (<=256 rows, rounded to a
    # sublane multiple so the block is unmasked); 256-row tiles for large batches so
    # per-step overhead is amortized and the "parallel" axis can be core-sharded.
    if B <= 256:
        tm = _round_up(B, 8)
    else:
        tm = 256
    b_pad = _round_up(B, tm)
    if b_pad != B:
        x = jnp.pad(x, ((0, b_pad - B), (0, 0)))
    n_tiles = b_pad // tm

    def const_spec(shape):
        # Whole array, same block every grid step -> DMA'd once, stays resident in VMEM.
        return pl.BlockSpec(shape, lambda i: tuple(0 for _ in shape))

    flops = 2 * b_pad * (f_in * w1.shape[1] + w1.shape[1] * w2.shape[1]
                         + w2.shape[1] * out_pad)
    bytes_accessed = int(
        sum(int(np.prod(p.shape)) * p.dtype.itemsize for p in packed_params)
        + x.size * 4 + b_pad * out_pad * 4)

    out = pl.pallas_call(
        actor_kernel,
        out_shape=jax.ShapeDtypeStruct((b_pad, out_pad), jnp.float32),
        grid=(n_tiles,),
        in_specs=[
            pl.BlockSpec((tm, f_in), lambda i: (i, 0)),   # x streams over batch tiles
            const_spec(w1.shape), const_spec(b1.shape),   # weights/biases resident
            const_spec(w2.shape), const_spec(b2.shape),
            const_spec(w3.shape), const_spec(b3.shape),
        ],
        out_specs=pl.BlockSpec((tm, out_pad), lambda i: (i, 0)),  # lane-dense output block
        compiler_params=pltpu.CompilerParams(dimension_semantics=("parallel",)),
        cost_estimate=pl.CostEstimate(flops=flops,
                                      transcendentals=b_pad * out_pad,
                                      bytes_accessed=bytes_accessed),
    )(x, w1, b1, w2, b2, w3, b3)

    return out[:B, :out_size]


def init_actor_params(key, input_size=33, output_size=4, hidden_sizes=(400, 300)):
    """Deterministic init matching ActorNetwork.reset_parameters():
    hidden weights ~ U(-1/sqrt(out_features), +1/sqrt(out_features)), hidden biases = 0.1;
    output weights ~ U(-0.003, 0.003), output bias = 0.1.  (Logical, unpadded, f32.)"""
    sizes = [input_size] + list(hidden_sizes)
    params = []
    keys = jax.random.split(key, len(hidden_sizes) + 1)
    for i, (fin, fout) in enumerate(zip(sizes[:-1], sizes[1:])):
        bound = 1.0 / np.sqrt(fout)  # f = layer.weight.data.size()[0] == out_features
        w = jax.random.uniform(keys[i], (fin, fout), jnp.float32, -bound, bound)
        b = jnp.full((1, fout), 0.1, jnp.float32)
        params.extend([w, b])
    w_out = jax.random.uniform(keys[-1], (sizes[-1], output_size), jnp.float32,
                               -0.003, 0.003)
    b_out = jnp.full((1, output_size), 0.1, jnp.float32)
    params.extend([w_out, b_out])
    return tuple(params)


def pack_actor_params(params):
    """Pad each layer's output dim (and the next layer's input dim) to a 128-lane
    multiple with zeros (math unchanged) and cast weights to bf16.  Biases stay f32."""
    packed = []
    prev_pad = None  # padded input width of the current layer
    n_layers = len(params) // 2
    for li in range(n_layers):
        w, b = params[2 * li], params[2 * li + 1]
        fin, fout = w.shape
        fin_pad = fin if prev_pad is None else prev_pad
        fout_pad = _round_up(fout, 128)
        wp = jnp.zeros((fin_pad, fout_pad), jnp.float32).at[:fin, :fout].set(w)
        bp = jnp.zeros((1, fout_pad), jnp.float32).at[:, :fout].set(b)
        packed.extend([wp.astype(jnp.bfloat16), bp])
        prev_pad = fout_pad
    return tuple(packed)


def actor_reference(x, params):
    """Pure-JAX f32 reference matching the PyTorch forward pass."""
    w1, b1, w2, b2, w3, b3 = params
    h = jnp.maximum(x @ w1 + b1, 0.0)
    h = jnp.maximum(h @ w2 + b2, 0.0)
    return jnp.tanh(h @ w3 + b3)


if __name__ == "__main__":
    key = jax.random.PRNGKey(0)
    pkey, xkey, xkey2 = jax.random.split(key, 3)

    input_size, output_size = 33, 4
    hidden_sizes = (400, 300)
    batch = 8

    params = init_actor_params(pkey, input_size, output_size, hidden_sizes)
    packed = pack_actor_params(params)

    # Small-batch path (single grid step, whole batch in one tile).
    x = jax.random.normal(xkey, (batch, input_size), jnp.float32)
    out = jax.block_until_ready(actor_forward(x, packed, output_size))
    ref = actor_reference(x, params)
    np.testing.assert_allclose(np.asarray(out), np.asarray(ref), rtol=2e-2, atol=2e-2)
    assert out.shape == (batch, output_size)
    assert bool(jnp.all(jnp.abs(out) <= 1.0))

    # Larger batch: exercises batch padding + multiple "parallel" grid steps
    # with VMEM-resident weights (600 -> 3 tiles of 256 rows).
    big_batch = 600
    x2 = jax.random.normal(xkey2, (big_batch, input_size), jnp.float32)
    out2 = jax.block_until_ready(actor_forward(x2, packed, output_size))
    ref2 = actor_reference(x2, params)
    np.testing.assert_allclose(np.asarray(out2), np.asarray(ref2), rtol=2e-2, atol=2e-2)
    assert out2.shape == (big_batch, output_size)

    print("KERNEL_OK")
</pallas_src>

<mosaic_0001>
module attributes {stable_mosaic.version = 11 : i64} {
  func.func @actor_kernel(%arg0: i32, %arg1: memref<8x33xf32, #tpu.memory_space<vmem>>, %arg2: memref<33x512xbf16, #tpu.memory_space<vmem>>, %arg3: memref<1x512xf32, #tpu.memory_space<vmem>>, %arg4: memref<512x384xbf16, #tpu.memory_space<vmem>>, %arg5: memref<1x384xf32, #tpu.memory_space<vmem>>, %arg6: memref<384x128xbf16, #tpu.memory_space<vmem>>, %arg7: memref<1x128xf32, #tpu.memory_space<vmem>>, %arg8: memref<8x128xf32, #tpu.memory_space<vmem>>) attributes {dimension_semantics = [#tpu.dimension_semantics<parallel>], iteration_bounds = array<i64: 1>, scalar_prefetch = 0 : i64, scratch_operands = 0 : i64, tpu.core_type = #tpu.core_type<tc>, window_params = [{transform_indices = @transform_0, window_bounds = array<i64: 8, 33>}, {pipeline_mode = #tpu.pipeline_mode<synchronous>, transform_indices = @transform_1, window_bounds = array<i64: 33, 512>}, {pipeline_mode = #tpu.pipeline_mode<synchronous>, transform_indices = @transform_2, window_bounds = array<i64: 1, 512>}, {pipeline_mode = #tpu.pipeline_mode<synchronous>, transform_indices = @transform_3, window_bounds = array<i64: 512, 384>}, {pipeline_mode = #tpu.pipeline_mode<synchronous>, transform_indices = @transform_4, window_bounds = array<i64: 1, 384>}, {pipeline_mode = #tpu.pipeline_mode<synchronous>, transform_indices = @transform_5, window_bounds = array<i64: 384, 128>}, {pipeline_mode = #tpu.pipeline_mode<synchronous>, transform_indices = @transform_6, window_bounds = array<i64: 1, 128>}, {transform_indices = @transform_7, window_bounds = array<i64: 8, 128>}]} {
    %c0 = arith.constant 0 : index
    %c0_0 = arith.constant 0 : index
    %0 = vector.load %arg1[%c0, %c0_0] : memref<8x33xf32, #tpu.memory_space<vmem>>, vector<8x33xf32>
    %1 = arith.truncf %0 : vector<8x33xf32> to vector<8x33xbf16>
    %c0_1 = arith.constant 0 : index
    %c0_2 = arith.constant 0 : index
    %2 = vector.load %arg2[%c0_1, %c0_2] : memref<33x512xbf16, #tpu.memory_space<vmem>>, vector<33x512xbf16>
    %cst = arith.constant dense<0.000000e+00> : vector<8x512xf32>
    %3 = tpu.matmul %1, %2, %cst {dimension_numbers = #tpu.dot_dimension_numbers<[1], [0], [0], [1], [0, 0, 1, 1], [], []>} : vector<8x33xbf16>, vector<33x512xbf16>, vector<8x512xf32> -> vector<8x512xf32>
    %c0_3 = arith.constant 0 : index
    %c0_4 = arith.constant 0 : index
    %4 = vector.load %arg3[%c0_3, %c0_4] : memref<1x512xf32, #tpu.memory_space<vmem>>, vector<1x512xf32>
    %5 = vector.broadcast %4 : vector<1x512xf32> to vector<8x512xf32>
    %6 = arith.addf %3, %5 : vector<8x512xf32>
    %cst_5 = arith.constant 0.000000e+00 : f32
    %7 = vector.broadcast %cst_5 : f32 to vector<8x512xf32>
    %8 = arith.maximumf %6, %7 : vector<8x512xf32>
    %9 = arith.truncf %8 : vector<8x512xf32> to vector<8x512xbf16>
    %c0_6 = arith.constant 0 : index
    %c0_7 = arith.constant 0 : index
    %10 = vector.load %arg4[%c0_6, %c0_7] : memref<512x384xbf16, #tpu.memory_space<vmem>>, vector<512x384xbf16>
    %cst_8 = arith.constant dense<0.000000e+00> : vector<8x384xf32>
    %11 = tpu.matmul %9, %10, %cst_8 {dimension_numbers = #tpu.dot_dimension_numbers<[1], [0], [0], [1], [0, 0, 1, 1], [], []>} : vector<8x512xbf16>, vector<512x384xbf16>, vector<8x384xf32> -> vector<8x384xf32>
    %c0_9 = arith.constant 0 : index
    %c0_10 = arith.constant 0 : index
    %12 = vector.load %arg5[%c0_9, %c0_10] : memref<1x384xf32, #tpu.memory_space<vmem>>, vector<1x384xf32>
    %13 = vector.broadcast %12 : vector<1x384xf32> to vector<8x384xf32>
    %14 = arith.addf %11, %13 : vector<8x384xf32>
    %cst_11 = arith.constant 0.000000e+00 : f32
    %15 = vector.broadcast %cst_11 : f32 to vector<8x384xf32>
    %16 = arith.maximumf %14, %15 : vector<8x384xf32>
    %17 = arith.truncf %16 : vector<8x384xf32> to vector<8x384xbf16>
    %c0_12 = arith.constant 0 : index
    %c0_13 = arith.constant 0 : index
    %18 = vector.load %arg6[%c0_12, %c0_13] : memref<384x128xbf16, #tpu.memory_space<vmem>>, vector<384x128xbf16>
    %cst_14 = arith.constant dense<0.000000e+00> : vector<8x128xf32>
    %19 = tpu.matmul %17, %18, %cst_14 {dimension_numbers = #tpu.dot_dimension_numbers<[1], [0], [0], [1], [0, 0, 1, 1], [], []>} : vector<8x384xbf16>, vector<384x128xbf16>, vector<8x128xf32> -> vector<8x128xf32>
    %c0_15 = arith.constant 0 : index
    %c0_16 = arith.constant 0 : index
    %20 = vector.load %arg7[%c0_15, %c0_16] : memref<1x128xf32, #tpu.memory_space<vmem>>, vector<1x128xf32>
    %21 = vector.broadcast %20 : vector<1x128xf32> to vector<8x128xf32>
    %22 = arith.addf %19, %21 : vector<8x128xf32>
    %23 = math.tanh %22 : vector<8x128xf32>
    %c0_17 = arith.constant 0 : index
    %c0_18 = arith.constant 0 : index
    %24 = vector.load %arg8[%c0_17, %c0_18] : memref<8x128xf32, #tpu.memory_space<vmem>>, vector<8x128xf32>
    tpu.vector_store %arg8[%c0_17, %c0_18], %23 {strides = array<i32>} : memref<8x128xf32, #tpu.memory_space<vmem>>, vector<8x128xf32>,
    return
  }
  func.func @transform_0(%arg0: i32) -> (i32, i32) {
    %c0_i32 = arith.constant 0 : i32
    %c0_i32_0 = arith.constant 0 : i32
    return %arg0, %c0_i32 : i32, i32
  }
  func.func @transform_1(%arg0: i32) -> (i32, i32) {
    %c0_i32 = arith.constant 0 : i32
    %c0_i32_0 = arith.constant 0 : i32
    %c0_i32_1 = arith.constant 0 : i32
    return %c0_i32, %c0_i32_0 : i32, i32
  }
  func.func @transform_2(%arg0: i32) -> (i32, i32) {
    %c0_i32 = arith.constant 0 : i32
    %c0_i32_0 = arith.constant 0 : i32
    %c0_i32_1 = arith.constant 0 : i32
    return %c0_i32, %c0_i32_0 : i32, i32
  }
  func.func @transform_3(%arg0: i32) -> (i32, i32) {
    %c0_i32 = arith.constant 0 : i32
    %c0_i32_0 = arith.constant 0 : i32
    %c0_i32_1 = arith.constant 0 : i32
    return %c0_i32, %c0_i32_0 : i32, i32
  }
  func.func @transform_4(%arg0: i32) -> (i32, i32) {
    %c0_i32 = arith.constant 0 : i32
    %c0_i32_0 = arith.constant 0 : i32
    %c0_i32_1 = arith.constant 0 : i32
    return %c0_i32, %c0_i32_0 : i32, i32
  }
  func.func @transform_5(%arg0: i32) -> (i32, i32) {
    %c0_i32 = arith.constant 0 : i32
    %c0_i32_0 = arith.constant 0 : i32
    %c0_i32_1 = arith.constant 0 : i32
    return %c0_i32, %c0_i32_0 : i32, i32
  }
  func.func @transform_6(%arg0: i32) -> (i32, i32) {
    %c0_i32 = arith.constant 0 : i32
    %c0_i32_0 = arith.constant 0 : i32
    %c0_i32_1 = arith.constant 0 : i32
    return %c0_i32, %c0_i32_0 : i32, i32
  }
  func.func @transform_7(%arg0: i32) -> (i32, i32) {
    %c0_i32 = arith.constant 0 : i32
    %c0_i32_0 = arith.constant 0 : i32
    return %arg0, %c0_i32 : i32, i32
  }
}

</mosaic_0001>

<bundles_post_ra>
// kernel: tpu_custom_call.1
= control target key start
LH: loop header
LB: loop body
LE: loop exit
PB: predicated region body
PF: predicated region fallthrough
CT: control target
= control target key end

     0   :  { %12 = vsyncpa [#allocation3], 0  ;;  %s2056_s0 = inlined_call_operand.hbm [shape: f32[8,33], index: 0, kind: input, shape index: {}]   ;;  %s2057_s1 = inlined_call_operand.hbm [shape: bf16[33,512], index: 1, kind: input, shape index: {}]   ;;  %s2058_s2 = inlined_call_operand.hbm [shape: f32[1,512], index: 2, kind: input, shape index: {}]   ;;  %s2059_s3 = inlined_call_operand.hbm [shape: bf16[512,384], index: 3, kind: input, shape index: {}]   ;;  %s2060_s4 = inlined_call_operand.vmem [shape: f32[1,384], index: 4, kind: input, shape index: {}]   ;;  %s2061_s5 = inlined_call_operand.hbm [shape: bf16[384,128], index: 5, kind: input, shape index: {}]   ;;  %s2062_s6 = inlined_call_operand.vmem [shape: f32[1,128], index: 6, kind: input, shape index: {}]   ;;  %s2063_s7 = inlined_call_operand.hbm [shape: f32[8,128], index: 7, kind: output, shape index: {}]  }
   0x1   :  { %13 = vsyncpa [#allocation6], 0 }
   0x2   :  { %14 = vsyncpa [#allocation9], 0 }
   0x3   :  { %15 = vsyncpa [#allocation4], 0  ;;  %s1951_s24 = smov [#allocation5]  }
   0x4   :  { %s31_s25 = sshll.u32 %s1951_s24, 4  ;;  %s32_s25 = int_to_ptr.vmem [resolvable:$true] %s31_s25 }
   0x5   :  { %s1831_s26 = scalar_lea.vmem %s32_s25, 1280  ;;  %p1836_p1 = scmp.lt.s32.totalorder %s32_s25, %s32_s25 }
   0x6   :  { %p1832_p0 = scmp.ne.s32.totalorder %s32_s25, %s1831_s26  ;;  %p1837_p2 = scmp.lt.s32.totalorder %s1831_s26, %s1831_s26 }
   0x8   :  { %p1838_p3 = por %p1837_p2, %p1836_p1 }
   0xa   :  { %p1839_p4 = pnand %p1838_p3, %p1832_p0 }
   0xc   :  { %1842 = shalt.err (!%p1839_p4)
}
   0xd   :  { %s1952_s27 = smov 256   ;;  %s1953_s28 = smov 16  }
   0xe   :  { %37 = dma.hbm_to_vmem [thread:$0]  %s2057_s1, 1280, %s32_s25, [#allocation6], %s1952_s27, %s1952_s27, %s1953_s28  }
   0xf   :  { %s1954_s8 = smov [#allocation8]  }
  0x10   :  { %s53_s9 = sshll.u32 %s1954_s8, 4  ;;  %s54_s9 = int_to_ptr.vmem [resolvable:$true] %s53_s9 }
  0x11   :  { %s1851_s10 = scalar_lea.vmem %s54_s9, 12288  ;;  %p1856_p6 = scmp.lt.s32.totalorder %s54_s9, %s54_s9 }
  0x12   :  { %p1852_p5 = scmp.ne.s32.totalorder %s54_s9, %s1851_s10  ;;  %p1857_p7 = scmp.lt.s32.totalorder %s1851_s10, %s1851_s10 }
  0x14   :  { %p1858_p8 = por %p1857_p7, %p1856_p6 }
  0x16   :  { %p1859_p9 = pnand %p1858_p8, %p1852_p5 }
  0x18   :  { %1862 = shalt.err (!%p1859_p9)
}
  0x19   :  { %s1955_s11 = smov 192   ;;  %s1956_s12 = smov 12  }
  0x1a   :  { %59 = dma.hbm_to_vmem [thread:$0]  %s2059_s3, 12288, %s54_s9, [#allocation9], %s1955_s11, %s1955_s11, %s1956_s12  }
  0x1b   :  { %s1957_s15 = smov [#allocation2]   ;;  %s1958_s17 = smov [#allocation7]  }
  0x1c   :  { %s22_s16 = sshll.u32 %s1957_s15, 4  ;;  %s44_s1 = sshll.u32 %s1958_s17, 4  ;;  %s23_s16 = int_to_ptr.vmem [resolvable:$true] %s22_s16  ;;  %s45_s1 = int_to_ptr.vmem [resolvable:$true] %s44_s1 }
  0x1d   :  { %s1871_s18 = scalar_lea.vmem %s23_s16, 128  ;;  %p1876_p11 = scmp.lt.s32.totalorder %s23_s16, %s23_s16 }
  0x1e   :  { %p1872_p10 = scmp.ne.s32.totalorder %s23_s16, %s1871_s18  ;;  %p1877_p12 = scmp.lt.s32.totalorder %s1871_s18, %s1871_s18 }
  0x20   :  { %p1878_p13 = por %p1877_p12, %p1876_p11 }
  0x22   :  { %p1879_p0 = pnand %p1878_p13, %p1872_p10 }
  0x24   :  { %1882 = shalt.err (!%p1879_p0)
}
  0x25   :  { %25 = dma.hbm_to_vmem [thread:$0]  %s2056_s0, 128, %s23_s16, [#allocation3]  }
  0x26   :  { %s1891_s21 = scalar_lea.vmem %s45_s1, 64  ;;  %p1896_p2 = scmp.lt.s32.totalorder %s45_s1, %s45_s1 }
  0x27   :  { %p1892_p1 = scmp.ne.s32.totalorder %s45_s1, %s1891_s21  ;;  %p1897_p3 = scmp.lt.s32.totalorder %s1891_s21, %s1891_s21 }
  0x29   :  { %p1898_p4 = por %p1897_p3, %p1896_p2 }
  0x2b   :  { %p1899_p5 = pnand %p1898_p4, %p1892_p1 }
  0x2d   :  { %1902 = shalt.err (!%p1899_p5)
}
  0x2e   :  { %47 = dma.hbm_to_vmem [thread:$0]  %s2058_s2, 64, %s45_s1, [#allocation6]  }
  0x2f   :  { %s1959_s23 = smov [#allocation10]  }
  0x30   :  { %s67_s24 = sshll.u32 %s1959_s23, 4  ;;  %s68_s24 = int_to_ptr.vmem [resolvable:$true] %s67_s24 }
  0x31   :  { %s1911_s25 = scalar_lea.vmem %s68_s24, 3072  ;;  %p1916_p7 = scmp.lt.s32.totalorder %s68_s24, %s68_s24 }
  0x32   :  { %p1912_p6 = scmp.ne.s32.totalorder %s68_s24, %s1911_s25  ;;  %p1917_p8 = scmp.lt.s32.totalorder %s1911_s25, %s1911_s25 }
  0x34   :  { %p1918_p9 = por %p1917_p8, %p1916_p7 }
  0x36   :  { %p1919_p10 = pnand %p1918_p9, %p1912_p6 }
  0x38   :  { %1922 = shalt.err (!%p1919_p10)
}
  0x39   :  { %s1960_s0 = smov 64   ;;  %s1961_s26 = smov 4  }
  0x3a   :  { %73 = dma.hbm_to_vmem [thread:$0]  %s2061_s5, 3072, %s68_s24, [#allocation9], %s1960_s0, %s1960_s0, %s1961_s26  }
  0x3b   :  { %1943 = dma.done.wait [#allocation3], 128  }
  0x3c   :  { %1944 = vsyncadd [#allocation3], 4294967168 }
  0x3d   :  { %1945 = dma.done.wait [#allocation6], 1344  }
  0x3e   :  { %1946 = vsyncadd [#allocation6], 4294965952 }
  0x3f   :  { %1947 = dma.done.wait [#allocation9], 15360  }
  0x40   :  { %1948 = vsyncadd [#allocation9], 4294951936  ;;  %v1962_v0 = vmov 0   ;;  %vm180_vm0 = vcmask 1040384   ;;  %v102_v1 = vld [vmem:[#allocation5 + $0x40] sm:$0x11] }
  0x41   :  { %227 = vmatprep.mubr.bf16.mxu0 %v1962_v0  ;;  %268 = vmatprep.mubr.bf16.mxu1 %v1962_v0  ;;  %v182_v2 = vsel %vm180_vm0, 65535, %v1962_v0  ;;  %v103_v3 = vld [vmem:[#allocation5 + $0x48] sm:$0x11]  ;;  %v1417_v4 = vcombine.high %v102_v1, %v102_v1  ;;  %v1416_v6 = vcombine.low %v102_v1, %v102_v1  ;;  %v1657_v8 = vld [vmem:[#allocation5 + $0x24] ss:$16 sps:$4 sm:$0xff]   ;;  %v92_v20 = vld [vmem:[#allocation2] sm:$0xff] }
  0x42   :  { %v1419_v5 = vcombine.high %v103_v3, %v103_v3  ;;  %v1418_v7 = vcombine.low %v103_v3, %v103_v3  ;;  %v1659_v13 = vld [vmem:[#allocation5 + $0x2c] ss:$16 sps:$4 sm:$0xff]   ;;  %v1661_v14 = vld [vmem:[#allocation5 + $0x20] ss:$16 sps:$4 sm:$0xff]   ;;  %v1662_v15 = vld [vmem:[#allocation5 + $0x28] ss:$16 sps:$4 sm:$0xff]   ;;  %v93_v23 = vpack.c.bf16 %v92_v20, %v92_v20 }
  0x43   :  { %v187_v9 = vand.u32 %v1417_v4, %v182_v2  ;;  %v184_v11 = vand.u32 %v1416_v6, %v182_v2  ;;  %v1663_v16 = vld [vmem:[#allocation5 + $0x4] ss:$16 sps:$4 sm:$0xff]   ;;  %v1665_v17 = vld [vmem:[#allocation5 + $0xc] ss:$16 sps:$4 sm:$0xff]   ;;  %v1667_v18 = vld [vmem:[#allocation5] ss:$16 sps:$4 sm:$0xff]  }
  0x44   :  { %v193_v10 = vand.u32 %v1419_v5, %v182_v2  ;;  %v190_v12 = vand.u32 %v1418_v7, %v182_v2  ;;  %v1668_v19 = vld [vmem:[#allocation5 + $0x8] ss:$16 sps:$4 sm:$0xff]   ;;  %v1671_v21 = vld [vmem:[#allocation8 + $0xac] ss:$12 sps:$4 sm:$0xff]   ;;  %vm176_vm1 = vcmask 269312   ;;  %vm1964_vm2 = vmmov 0  }
  0x45   :  { %205 = vmatprep.subr.bf16.mxu0 %v187_v9  ;;  %v1674_v22 = vld [vmem:[#allocation8 + $0x22c] ss:$12 sps:$4 sm:$0xff]   ;;  %v1669_v24 = vld [vmem:[#allocation8 + $0xa8] ss:$12 sps:$4 sm:$0xff]   ;;  %v1675_v28 = vld [vmem:[#allocation8 + $0x90] ss:$12 sps:$4 sm:$0xff]  }
  0x46   :  { %246 = vmatprep.subr.bf16.mxu1 %v193_v10  ;;  %206 = vmatpush1.bf16.msra.mxu0 %v184_v11  ;;  %v1672_v25 = vld [vmem:[#allocation8 + $0x228] ss:$12 sps:$4 sm:$0xff]   ;;  %v1678_v29 = vld [vmem:[#allocation8 + $0x210] ss:$12 sps:$4 sm:$0xff]   ;;  %v1681_v32 = vld [vmem:[#allocation8 + $0x78] ss:$12 sps:$4 sm:$0xff]  }
  0x47   :  { %247 = vmatpush1.bf16.msra.mxu1 %v190_v12  ;;  %207 = vmatprep.subr.bf16.mxu0 %v1657_v8  ;;  %v1677_v26 = vld [vmem:[#allocation8 + $0x94] ss:$12 sps:$4 sm:$0xff]   ;;  %v1683_v30 = vld [vmem:[#allocation8 + $0x7c] ss:$12 sps:$4 sm:$0xff]   ;;  %v1684_v33 = vld [vmem:[#allocation8 + $0x1f8] ss:$12 sps:$4 sm:$0xff]  }
  0x48   :  { %248 = vmatprep.subr.bf16.mxu1 %v1659_v13  ;;  %v1680_v27 = vld [vmem:[#allocation8 + $0x214] ss:$12 sps:$4 sm:$0xff]   ;;  %v1686_v31 = vld [vmem:[#allocation8 + $0x1fc] ss:$12 sps:$4 sm:$0xff]   ;;  %v1689_v34 = vld [vmem:[#allocation8 + $0x64] ss:$12 sps:$4 sm:$0xff]  }
  0x49   :  { %v1692_v35 = vld [vmem:[#allocation8 + $0x1e4] ss:$12 sps:$4 sm:$0xff]   ;;  %v1687_v36 = vld [vmem:[#allocation8 + $0x60] ss:$12 sps:$4 sm:$0xff]   ;;  %v1693_v40 = vld [vmem:[#allocation8 + $0x48] ss:$12 sps:$4 sm:$0xff]  }
  0x4a   :  { %208 = vmatpush1.bf16.msra.mxu0 %v1661_v14  ;;  %v1690_v37 = vld [vmem:[#allocation8 + $0x1e0] ss:$12 sps:$4 sm:$0xff]   ;;  %v1696_v41 = vld [vmem:[#allocation8 + $0x1c8] ss:$12 sps:$4 sm:$0xff]   ;;  %v1699_v44 = vld [vmem:[#allocation8 + $0x30] ss:$12 sps:$4 sm:$0xff]  }
  0x4b   :  { %249 = vmatpush1.bf16.msra.mxu1 %v1662_v15  ;;  %209 = vmatprep.subr.bf16.mxu0 %v1663_v16  ;;  %v1695_v38 = vld [vmem:[#allocation8 + $0x4c] ss:$12 sps:$4 sm:$0xff]   ;;  %v1701_v42 = vld [vmem:[#allocation8 + $0x34] ss:$12 sps:$4 sm:$0xff]   ;;  %v1702_v45 = vld [vmem:[#allocation8 + $0x1b0] ss:$12 sps:$4 sm:$0xff]  }
  0x4c   :  { %250 = vmatprep.subr.bf16.mxu1 %v1665_v17  ;;  %v1698_v39 = vld [vmem:[#allocation8 + $0x1cc] ss:$12 sps:$4 sm:$0xff]   ;;  %v1704_v43 = vld [vmem:[#allocation8 + $0x1b4] ss:$12 sps:$4 sm:$0xff]   ;;  %v1707_v46 = vld [vmem:[#allocation8 + $0x1c] ss:$12 sps:$4 sm:$0xff]  }
  0x4d   :  { %v1710_v47 = vld [vmem:[#allocation8 + $0x19c] ss:$12 sps:$4 sm:$0xff]   ;;  %v1705_v48 = vld [vmem:[#allocation8 + $0x18] ss:$12 sps:$4 sm:$0xff]   ;;  %v1711_v52 = vld [vmem:[#allocation8] ss:$12 sps:$4 sm:$0xff]  }
  0x4e   :  { %210 = vmatpush1.bf16.msra.mxu0 %v1667_v18  ;;  %v1708_v49 = vld [vmem:[#allocation8 + $0x198] ss:$12 sps:$4 sm:$0xff]   ;;  %v1714_v53 = vld [vmem:[#allocation8 + $0x180] ss:$12 sps:$4 sm:$0xff]   ;;  %v1717_v56 = vld [vmem:[#allocation8 + $0x168] ss:$12 sps:$4 sm:$0xff]  }
  0x4f   :  { %251 = vmatpush1.bf16.msra.mxu1 %v1668_v19  ;;  %942 = vmatprep.subr.bf16.mxu0 %v1671_v21  ;;  %v1713_v50 = vld [vmem:[#allocation8 + $0x4] ss:$12 sps:$4 sm:$0xff]   ;;  %v1719_v54 = vld [vmem:[#allocation8 + $0x16c] ss:$12 sps:$4 sm:$0xff]   ;;  %v1720_v57 = vld [vmem:[#allocation8 + $0x2e8] ss:$12 sps:$4 sm:$0xff]  }
  0x50   :  { %983 = vmatprep.subr.bf16.mxu1 %v1674_v22  ;;  %v1716_v51 = vld [vmem:[#allocation8 + $0x184] ss:$12 sps:$4 sm:$0xff]   ;;  %v1722_v55 = vld [vmem:[#allocation8 + $0x2ec] ss:$12 sps:$4 sm:$0xff]   ;;  %v1725_v58 = vld [vmem:[#allocation8 + $0x154] ss:$12 sps:$4 sm:$0xff]  }
  0x51   :  { %1420 = vmatmul.mubr.msk.bf16.vlgmr.msra.gmra.mxu0 %vm176_vm1, %v93_v23  ;;  %v1728_v59 = vld [vmem:[#allocation8 + $0x2d4] ss:$12 sps:$4 sm:$0xff]   ;;  %v1723_v60 = vld [vmem:[#allocation8 + $0x150] ss:$12 sps:$4 sm:$0xff]   ;;  %v1729_v0 = vld [vmem:[#allocation8 + $0x138] ss:$12 sps:$4 sm:$0xff]  }
  0x52   :  { %1421 = vmatmul.mubr.msk.bf16.vlgmr.msra.gmra.mxu1 %vm176_vm1, %v93_v23  ;;  %943 = vmatpush1.bf16.msra.mxu0 %v1669_v24  ;;  %v1726_v61 = vld [vmem:[#allocation8 + $0x2d0] ss:$12 sps:$4 sm:$0xff]   ;;  %v1732_v1 = vld [vmem:[#allocation8 + $0x2b8] ss:$12 sps:$4 sm:$0xff]   ;;  %v1735_v4 = vld [vmem:[#allocation8 + $0x120] ss:$12 sps:$4 sm:$0xff]   ;;  %v106_v24 = vlaneseq }
  0x53   :  { %984 = vmatpush1.bf16.msra.mxu1 %v1672_v25  ;;  %944 = vmatprep.subr.bf16.mxu0 %v1677_v26  ;;  %v1731_v62 = vld [vmem:[#allocation8 + $0x13c] ss:$12 sps:$4 sm:$0xff]   ;;  %v1737_v2 = vld [vmem:[#allocation8 + $0x124] ss:$12 sps:$4 sm:$0xff]   ;;  %v1738_v5 = vld [vmem:[#allocation8 + $0x2a0] ss:$12 sps:$4 sm:$0xff]  }
  0x54   :  { %985 = vmatprep.subr.bf16.mxu1 %v1680_v27  ;;  %v1734_v63 = vld [vmem:[#allocation8 + $0x2bc] ss:$12 sps:$4 sm:$0xff]   ;;  %v1740_v3 = vld [vmem:[#allocation8 + $0x2a4] ss:$12 sps:$4 sm:$0xff]   ;;  %v1743_v6 = vld [vmem:[#allocation8 + $0x10c] ss:$12 sps:$4 sm:$0xff]  }
  0x55   :  { %v1746_v7 = vld [vmem:[#allocation8 + $0x28c] ss:$12 sps:$4 sm:$0xff]   ;;  %v1741_v8 = vld [vmem:[#allocation8 + $0x108] ss:$12 sps:$4 sm:$0xff]   ;;  %v1747_v12 = vld [vmem:[#allocation8 + $0xf0] ss:$12 sps:$4 sm:$0xff]  }
  0x56   :  { %945 = vmatpush1.bf16.msra.mxu0 %v1675_v28  ;;  %v1744_v9 = vld [vmem:[#allocation8 + $0x288] ss:$12 sps:$4 sm:$0xff]   ;;  %v1750_v13 = vld [vmem:[#allocation8 + $0x270] ss:$12 sps:$4 sm:$0xff]   ;;  %v1753_v16 = vld [vmem:[#allocation8 + $0xd8] ss:$12 sps:$4 sm:$0xff]  }
  0x57   :  { %986 = vmatpush1.bf16.msra.mxu1 %v1678_v29  ;;  %946 = vmatprep.subr.bf16.mxu0 %v1683_v30  ;;  %v1749_v10 = vld [vmem:[#allocation8 + $0xf4] ss:$12 sps:$4 sm:$0xff]   ;;  %v1755_v14 = vld [vmem:[#allocation8 + $0xdc] ss:$12 sps:$4 sm:$0xff]   ;;  %v1756_v17 = vld [vmem:[#allocation8 + $0x258] ss:$12 sps:$4 sm:$0xff]  }
  0x58   :  { %987 = vmatprep.subr.bf16.mxu1 %v1686_v31  ;;  %v1752_v11 = vld [vmem:[#allocation8 + $0x274] ss:$12 sps:$4 sm:$0xff]   ;;  %v1758_v15 = vld [vmem:[#allocation8 + $0x25c] ss:$12 sps:$4 sm:$0xff]   ;;  %v1761_v18 = vld [vmem:[#allocation8 + $0xc4] ss:$12 sps:$4 sm:$0xff]  }
  0x59   :  { %v1764_v19 = vld [vmem:[#allocation8 + $0x244] ss:$12 sps:$4 sm:$0xff]   ;;  %v1759_v20 = vld [vmem:[#allocation8 + $0xc0] ss:$12 sps:$4 sm:$0xff]   ;;  %v2021_v25 = vshrl.u32 %v106_v24, 7  ;;  %s1965_s30 = smov [#allocation11]  }
  0x5a   :  { %947 = vmatpush1.bf16.msra.mxu0 %v1681_v32  ;;  %v1762_v21 = vld [vmem:[#allocation8 + $0x240] ss:$12 sps:$4 sm:$0xff]   ;;  %v1765_v22 = vld [vmem:[#allocation8 + $0x170] ss:$12 sps:$4 sm:$0xff]   ;;  %s1397_s8 = sshll.u32 %s1965_s30, 4  ;;  %s1398_s8 = int_to_ptr.vmem [resolvable:$true] %s1397_s8 }
  0x5b   :  { %988 = vmatpush1.bf16.msra.mxu1 %v1684_v33  ;;  %948 = vmatprep.subr.bf16.mxu0 %v1689_v34  ;;  %v1766_v23 = vld [vmem:[#allocation8 + $0x2f0] ss:$12 sps:$4 sm:$0xff]   ;;  %v108_v26 = vsub.s32 0, %v2021_v25  ;;  %v116_v27 = vsub.s32 2, %v2021_v25  ;;  %v112_v29 = vsub.s32 1, %v2021_v25  ;;  %v120_v30 = vsub.s32 3, %v2021_v25  ;;  %p1928_p12 = scmp.lt.s32.totalorder %s1398_s8, %s1398_s8 }
  0x5c   :  { %989 = vmatprep.subr.bf16.mxu1 %v1692_v35  ;;  %v104_v28 = vld [vmem:[#allocation7] sm:$0xf]  ;;  %v1800_v24 = vld [vmem:[#allocation10 + $0x30] sm:$0xff]   ;;  %v1518_v25 = vld [vmem:[%s2062_s6] ss:$0 sm:$0xff]  ;;  %s1923_s9 = scalar_lea.vmem %s1398_s8, 128 }
  0x5d   :  { %v109_v31 = vrot.slane %v104_v28, %v108_v26  ;;  %v117_v32 = vrot.slane %v104_v28, %v116_v27  ;;  %v113_v33 = vrot.slane %v104_v28, %v112_v29  ;;  %v121_v34 = vrot.slane %v104_v28, %v120_v30  ;;  %v1801_v28 = vld [vmem:[#allocation10 + $0x68] sm:$0xff]   ;;  %p1924_p11 = scmp.ne.s32.totalorder %s1398_s8, %s1923_s9  ;;  %p1929_p13 = scmp.lt.s32.totalorder %s1923_s9, %s1923_s9 }
  0x5e   :  { %949 = vmatpush1.bf16.msra.mxu0 %v1687_v36  ;;  %v1802_v30 = vld [vmem:[#allocation10 + $0x28] sm:$0xff]  }
  0x5f   :  { %990 = vmatpush1.bf16.msra.mxu1 %v1690_v37  ;;  %950 = vmatprep.subr.bf16.mxu0 %v1695_v38  ;;  %p1930_p0 = por %p1929_p13, %p1928_p12 }
  0x60   :  { %991 = vmatprep.subr.bf16.mxu1 %v1698_v39 }
  0x61   :  { %p1931_p1 = pnand %p1930_p0, %p1924_p11 }
  0x62   :  { %951 = vmatpush1.bf16.msra.mxu0 %v1693_v40 }
  0x63   :  { %992 = vmatpush1.bf16.msra.mxu1 %v1696_v41  ;;  %952 = vmatprep.subr.bf16.mxu0 %v1701_v42 }
  0x64   :  { %993 = vmatprep.subr.bf16.mxu1 %v1704_v43 }
  0x66   :  { %953 = vmatpush1.bf16.msra.mxu0 %v1699_v44 }
  0x67   :  { %994 = vmatpush1.bf16.msra.mxu1 %v1702_v45  ;;  %954 = vmatprep.subr.bf16.mxu0 %v1707_v46 }
  0x68   :  { %995 = vmatprep.subr.bf16.mxu1 %v1710_v47 }
  0x6a   :  { %955 = vmatpush1.bf16.msra.mxu0 %v1705_v48 }
  0x6b   :  { %996 = vmatpush1.bf16.msra.mxu1 %v1708_v49  ;;  %956 = vmatprep.subr.bf16.mxu0 %v1713_v50 }
  0x6c   :  { %997 = vmatprep.subr.bf16.mxu1 %v1716_v51 }
  0x6e   :  { %957 = vmatpush1.bf16.msra.mxu0 %v1711_v52 }
  0x6f   :  { %998 = vmatpush1.bf16.msra.mxu1 %v1714_v53  ;;  %958 = vmatprep.subr.bf16.mxu0 %v1719_v54  ;;  %v1767_v54 = vld [vmem:[#allocation8 + $0xb0] ss:$12 sps:$4 sm:$0xff]  }
  0x70   :  { %999 = vmatprep.subr.bf16.mxu1 %v1722_v55  ;;  %v1768_v55 = vld [vmem:[#allocation8 + $0x230] ss:$12 sps:$4 sm:$0xff]  }
  0x72   :  { %959 = vmatpush2.bf16.msra.mxu0 %v1717_v56 }
  0x73   :  { %1000 = vmatpush2.bf16.msra.mxu1 %v1720_v57  ;;  %960 = vmatprep.subr.bf16.mxu0 %v1725_v58  ;;  %v1769_v57 = vld [vmem:[#allocation8 + $0x158] ss:$12 sps:$4 sm:$0xff]  }
  0x74   :  { %1001 = vmatprep.subr.bf16.mxu1 %v1728_v59  ;;  %v1770_v58 = vld [vmem:[#allocation8 + $0x2d8] ss:$12 sps:$4 sm:$0xff]  }
  0x75   :  { %v1771_v59 = vld [vmem:[#allocation8 + $0x98] ss:$12 sps:$4 sm:$0xff]  }
  0x76   :  { %961 = vmatpush2.bf16.msra.mxu0 %v1723_v60  ;;  %v1772_v60 = vld [vmem:[#allocation8 + $0x218] ss:$12 sps:$4 sm:$0xff]  }
  0x77   :  { %1002 = vmatpush2.bf16.msra.mxu1 %v1726_v61  ;;  %962 = vmatprep.subr.bf16.mxu0 %v1731_v62  ;;  %v1773_v61 = vld [vmem:[#allocation8 + $0x140] ss:$12 sps:$4 sm:$0xff]  }
  0x78   :  { %1003 = vmatprep.subr.bf16.mxu1 %v1734_v63  ;;  %v1774_v62 = vld [vmem:[#allocation8 + $0x2c0] ss:$12 sps:$4 sm:$0xff]  }
  0x79   :  { %v1775_v63 = vld [vmem:[#allocation8 + $0x80] ss:$12 sps:$4 sm:$0xff]  }
  0x7a   :  { %963 = vmatpush2.bf16.msra.mxu0 %v1729_v0  ;;  %v1776_v0 = vld [vmem:[#allocation8 + $0x200] ss:$12 sps:$4 sm:$0xff]  }
  0x7b   :  { %1004 = vmatpush2.bf16.msra.mxu1 %v1732_v1  ;;  %964 = vmatprep.subr.bf16.mxu0 %v1737_v2  ;;  %v1777_v1 = vld [vmem:[#allocation8 + $0x128] ss:$12 sps:$4 sm:$0xff]  }
  0x7c   :  { %1005 = vmatprep.subr.bf16.mxu1 %v1740_v3  ;;  %v1778_v2 = vld [vmem:[#allocation8 + $0x2a8] ss:$12 sps:$4 sm:$0xff]  }
  0x7d   :  { %v1779_v3 = vld [vmem:[#allocation8 + $0x68] ss:$12 sps:$4 sm:$0xff]  }
  0x7e   :  { %965 = vmatpush2.bf16.msra.mxu0 %v1735_v4  ;;  %v1780_v4 = vld [vmem:[#allocation8 + $0x1e8] ss:$12 sps:$4 sm:$0xff]  }
  0x7f   :  { %1006 = vmatpush2.bf16.msra.mxu1 %v1738_v5  ;;  %966 = vmatprep.subr.bf16.mxu0 %v1743_v6  ;;  %v1781_v5 = vld [vmem:[#allocation8 + $0x110] ss:$12 sps:$4 sm:$0xff]  }
  0x80   :  { %1007 = vmatprep.subr.bf16.mxu1 %v1746_v7  ;;  %v1782_v6 = vld [vmem:[#allocation8 + $0x290] ss:$12 sps:$4 sm:$0xff]  }
  0x81   :  { %v1783_v7 = vld [vmem:[#allocation8 + $0x50] ss:$12 sps:$4 sm:$0xff]  }
  0x82   :  { %967 = vmatpush2.bf16.msra.mxu0 %v1741_v8  ;;  %v1784_v8 = vld [vmem:[#allocation8 + $0x1d0] ss:$12 sps:$4 sm:$0xff]  }
  0x83   :  { %1008 = vmatpush2.bf16.msra.mxu1 %v1744_v9  ;;  %968 = vmatprep.subr.bf16.mxu0 %v1749_v10  ;;  %v1785_v9 = vld [vmem:[#allocation8 + $0xf8] ss:$12 sps:$4 sm:$0xff]  }
  0x84   :  { %1009 = vmatprep.subr.bf16.mxu1 %v1752_v11  ;;  %v1786_v10 = vld [vmem:[#allocation8 + $0x278] ss:$12 sps:$4 sm:$0xff]  }
  0x85   :  { %v1787_v11 = vld [vmem:[#allocation8 + $0x38] ss:$12 sps:$4 sm:$0xff]  }
  0x86   :  { %969 = vmatpush2.bf16.msra.mxu0 %v1747_v12  ;;  %v1788_v12 = vld [vmem:[#allocation8 + $0x1b8] ss:$12 sps:$4 sm:$0xff]  }
  0x87   :  { %1010 = vmatpush2.bf16.msra.mxu1 %v1750_v13  ;;  %970 = vmatprep.subr.bf16.mxu0 %v1755_v14  ;;  %v1789_v13 = vld [vmem:[#allocation8 + $0xe0] ss:$12 sps:$4 sm:$0xff]  }
  0x88   :  { %1011 = vmatprep.subr.bf16.mxu1 %v1758_v15  ;;  %v1790_v14 = vld [vmem:[#allocation8 + $0x260] ss:$12 sps:$4 sm:$0xff]  }
  0x89   :  { %v1791_v15 = vld [vmem:[#allocation8 + $0x20] ss:$12 sps:$4 sm:$0xff]  }
  0x8a   :  { %971 = vmatpush2.bf16.msra.mxu0 %v1753_v16  ;;  %v1792_v16 = vld [vmem:[#allocation8 + $0x1a0] ss:$12 sps:$4 sm:$0xff]  }
  0x8b   :  { %1012 = vmatpush2.bf16.msra.mxu1 %v1756_v17  ;;  %972 = vmatprep.subr.bf16.mxu0 %v1761_v18  ;;  %v1793_v17 = vld [vmem:[#allocation8 + $0xc8] ss:$12 sps:$4 sm:$0xff]  }
  0x8c   :  { %1013 = vmatprep.subr.bf16.mxu1 %v1764_v19  ;;  %v1794_v18 = vld [vmem:[#allocation8 + $0x248] ss:$12 sps:$4 sm:$0xff]  }
  0x8d   :  { %v1795_v19 = vld [vmem:[#allocation8 + $0x8] ss:$12 sps:$4 sm:$0xff]  }
  0x8e   :  { %973 = vmatpush2.bf16.msra.mxu0 %v1759_v20  ;;  %v1796_v20 = vld [vmem:[#allocation8 + $0x188] ss:$12 sps:$4 sm:$0xff]  }
  0x8f   :  { %1014 = vmatpush2.bf16.msra.mxu1 %v1762_v21  ;;  %1543 = vmatprep.subr.bf16.mxu0 %v1765_v22  ;;  %v1797_v21 = vld [vmem:[#allocation10 + $0x78] sm:$0xff]  }
  0x90   :  { %1565 = vmatprep.subr.bf16.mxu1 %v1766_v23  ;;  %v1798_v22 = vld [vmem:[#allocation10 + $0x38] sm:$0xff]   ;;  %v1799_v23 = vld [vmem:[#allocation10 + $0x70] sm:$0xff]  }
 0x111   :  { %v229_v35 = vpop.f32.mrf.mxu0 }
 0x112   :  { %v270_v36 = vpop.f32.mrf.mxu1  ;;  %v230_v37 = vadd.f32 %v229_v35, %v109_v31  ;;  %v1803_v31 = vld [vmem:[#allocation10 + $0x60] sm:$0xff]   ;;  %v1807_v35 = vld [vmem:[#allocation10 + $0x50] sm:$0xff]  }
 0x113   :  { %v271_v38 = vadd.f32 %v270_v36, %v117_v32  ;;  %v231_v39 = vpop.f32.mrf.mxu0  ;;  %v1804_v32 = vld [vmem:[#allocation10 + $0x20] sm:$0xff]   ;;  %v1808_v36 = vld [vmem:[#allocation10 + $0x10] sm:$0xff]  }
 0x114   :  { %v272_v40 = vpop.f32.mrf.mxu1  ;;  %v232_v42 = vadd.f32 %v231_v39, %v113_v33  ;;  %v277_v44 = vmax.f32 %v230_v37, 0.0  ;;  %v1805_v33 = vld [vmem:[#allocation10 + $0x58] sm:$0xff]   ;;  %v1809_v37 = vld [vmem:[#allocation10 + $0x48] sm:$0xff]   ;;  %v1811_v39 = vld [vmem:[#allocation10 + $0x40] sm:$0xff]  }
 0x115   :  { %v279_v41 = vmax.f32 %v271_v38, 0.0  ;;  %v273_v43 = vadd.f32 %v272_v40, %v121_v34  ;;  %v233_v45 = vpop.f32.mrf.mxu0  ;;  %v1806_v34 = vld [vmem:[#allocation10 + $0x18] sm:$0xff]   ;;  %v1810_v38 = vld [vmem:[#allocation10 + $0x8] sm:$0xff]   ;;  %v1812_v40 = vld [vmem:[#allocation10] sm:$0xff]  }
 0x116   :  { %v274_v46 = vpop.f32.mrf.mxu1  ;;  %v278_v47 = vmax.f32 %v232_v42, 0.0  ;;  %v2035_v56 = vpack.c.bf16 %v277_v44, %v277_v44  ;;  %v1963_v42 = vmov 0.0   ;;  %v1815_v44 = vld [vmem:[#allocation10 + $0xa8] sm:$0xff]   ;;  %v1816_v45 = vld [vmem:[#allocation10 + $0xa0] sm:$0xff]  }
 0x117   :  { %v280_v48 = vmax.f32 %v273_v43, 0.0  ;;  %v2033_v49 = vpack.c.bf16 %v279_v41, %v279_v41  ;;  %v234_v50 = vpop.f32.mrf.mxu0  ;;  %v1813_v41 = vld [vmem:[#allocation10 + $0xb8] sm:$0xff]   ;;  %v1814_v43 = vld [vmem:[#allocation10 + $0xb0] sm:$0xff]  }
 0x118   :  { %v275_v51 = vpop.f32.mrf.mxu1  ;;  %v282_v52 = vpack.c.bf16 %v278_v47, %v278_v47  ;;  %v1817_v46 = vld [vmem:[#allocation10 + $0x98] sm:$0xff]   ;;  %v1818_v47 = vld [vmem:[#allocation10 + $0x90] sm:$0xff]   ;;  %v413_v50 = vld [vmem:[%s2060_s4] sm:$0x7] }
 0x119   :  { %v284_v53 = vpack.c.bf16 %v280_v48, %v280_v48  ;;  %v1819_v48 = vld [vmem:[#allocation10 + $0x88] sm:$0xff]   ;;  %v418_v51 = vrot.slane %v413_v50, %v108_v26 }
 0x11a   :  { %974 = vmatprep.mubr.bf16.mxu0 %v282_v52 }
 0x11b   :  { %1015 = vmatprep.mubr.bf16.mxu1 %v284_v53  ;;  %975 = vmatmul.mubr.bf16.vlgmr.msra.gmra.mxu0 %v2035_v56 }
 0x11c   :  { %1016 = vmatmul.mubr.bf16.vlgmr.msra.gmra.mxu1 %v2033_v49  ;;  %1544 = vmatpush3.bf16.msra.mxu0 %v1767_v54 }
 0x11d   :  { %1566 = vmatpush3.bf16.msra.mxu1 %v1768_v55  ;;  %1056 = vmatprep.mubr.bf16.mxu0 %v282_v52  ;;  %v422_v52 = vrot.slane %v413_v50, %v112_v29 }
 0x11e   :  { %1096 = vmatprep.mubr.bf16.mxu1 %v284_v53  ;;  %1545 = vmatprep.subr.bf16.mxu0 %v1769_v57 }
 0x11f   :  { %1567 = vmatprep.subr.bf16.mxu1 %v1770_v58 }
 0x120   :  { %1546 = vmatpush3.bf16.msra.mxu0 %v1771_v59 }
 0x121   :  { %1568 = vmatpush3.bf16.msra.mxu1 %v1772_v60  ;;  %1547 = vmatprep.subr.bf16.mxu0 %v1773_v61 }
 0x122   :  { %1569 = vmatprep.subr.bf16.mxu1 %v1774_v62 }
 0x124   :  { %1548 = vmatpush3.bf16.msra.mxu0 %v1775_v63 }
 0x125   :  { %1570 = vmatpush3.bf16.msra.mxu1 %v1776_v0  ;;  %1549 = vmatprep.subr.bf16.mxu0 %v1777_v1 }
 0x126   :  { %1571 = vmatprep.subr.bf16.mxu1 %v1778_v2 }
 0x128   :  { %1550 = vmatpush3.bf16.msra.mxu0 %v1779_v3 }
 0x129   :  { %1572 = vmatpush3.bf16.msra.mxu1 %v1780_v4  ;;  %1551 = vmatprep.subr.bf16.mxu0 %v1781_v5  ;;  %v426_v5 = vrot.slane %v413_v50, %v116_v27 }
 0x12a   :  { %1573 = vmatprep.subr.bf16.mxu1 %v1782_v6 }
 0x12c   :  { %1552 = vmatpush3.bf16.msra.mxu0 %v1783_v7 }
 0x12d   :  { %1574 = vmatpush3.bf16.msra.mxu1 %v1784_v8  ;;  %1553 = vmatprep.subr.bf16.mxu0 %v1785_v9 }
 0x12e   :  { %1575 = vmatprep.subr.bf16.mxu1 %v1786_v10 }
 0x130   :  { %1554 = vmatpush3.bf16.msra.mxu0 %v1787_v11 }
 0x131   :  { %1576 = vmatpush3.bf16.msra.mxu1 %v1788_v12  ;;  %1555 = vmatprep.subr.bf16.mxu0 %v1789_v13 }
 0x132   :  { %1577 = vmatprep.subr.bf16.mxu1 %v1790_v14 }
 0x134   :  { %1556 = vmatpush3.bf16.msra.mxu0 %v1791_v15 }
 0x135   :  { %1578 = vmatpush3.bf16.msra.mxu1 %v1792_v16  ;;  %1557 = vmatprep.subr.bf16.mxu0 %v1793_v17 }
 0x136   :  { %1579 = vmatprep.subr.bf16.mxu1 %v1794_v18 }
 0x138   :  { %1558 = vmatpush3.bf16.msra.mxu0 %v1795_v19 }
 0x139   :  { %1580 = vmatpush3.bf16.msra.mxu1 %v1796_v20  ;;  %1587 = vmatprep.subr.bf16.mxu0 %v1797_v21 }
 0x13a   :  { %1618 = vmatprep.subr.bf16.mxu1 %v1963_v42 }
 0x13b   :  { %1057 = vmatmul.mubr.bf16.vlgmr.msra.gmra.mxu0 %v2035_v56 }
 0x13c   :  { %1097 = vmatmul.mubr.bf16.vlgmr.msra.gmra.mxu1 %v2033_v49  ;;  %1588 = vmatpush3.bf16.msra.mxu0 %v1798_v22  ;;  %v1820_v49 = vld [vmem:[#allocation10 + $0x80] sm:$0xff]  }
 0x13d   :  { %1589 = vmatprep.subr.bf16.mxu0 %v1799_v23  ;;  %1619 = vmatpush3.bf16.msra.mxu1 %v1813_v41 }
 0x13e   :  { %1620 = vmatprep.subr.bf16.mxu1 %v1963_v42  ;;  %1634 = vmatprep.mubr.msk.bf16.mxu1 %vm1964_vm2, %v1963_v42 }
 0x140   :  { %1590 = vmatpush3.bf16.msra.mxu0 %v1800_v24 }
 0x141   :  { %1591 = vmatprep.subr.bf16.mxu0 %v1801_v28  ;;  %1621 = vmatpush3.bf16.msra.mxu1 %v1814_v43 }
 0x142   :  { %1622 = vmatprep.subr.bf16.mxu1 %v1963_v42 }
 0x144   :  { %1592 = vmatpush3.bf16.msra.mxu0 %v1802_v30 }
 0x145   :  { %1593 = vmatprep.subr.bf16.mxu0 %v1803_v31  ;;  %1623 = vmatpush3.bf16.msra.mxu1 %v1815_v44 }
 0x146   :  { %1624 = vmatprep.subr.bf16.mxu1 %v1963_v42 }
 0x148   :  { %1594 = vmatpush3.bf16.msra.mxu0 %v1804_v32 }
 0x149   :  { %1595 = vmatprep.subr.bf16.mxu0 %v1805_v33  ;;  %1625 = vmatpush3.bf16.msra.mxu1 %v1816_v45 }
 0x14a   :  { %1626 = vmatprep.subr.bf16.mxu1 %v1963_v42 }
 0x14c   :  { %1596 = vmatpush3.bf16.msra.mxu0 %v1806_v34 }
 0x14d   :  { %1597 = vmatprep.subr.bf16.mxu0 %v1807_v35  ;;  %1627 = vmatpush3.bf16.msra.mxu1 %v1817_v46 }
 0x14e   :  { %1628 = vmatprep.subr.bf16.mxu1 %v1963_v42 }
 0x150   :  { %1598 = vmatpush3.bf16.msra.mxu0 %v1808_v36 }
 0x151   :  { %1599 = vmatprep.subr.bf16.mxu0 %v1809_v37  ;;  %1629 = vmatpush3.bf16.msra.mxu1 %v1818_v47 }
 0x152   :  { %1630 = vmatprep.subr.bf16.mxu1 %v1963_v42 }
 0x154   :  { %1600 = vmatpush3.bf16.msra.mxu0 %v1810_v38 }
 0x155   :  { %1601 = vmatprep.subr.bf16.mxu0 %v1811_v39  ;;  %1631 = vmatpush3.bf16.msra.mxu1 %v1819_v48 }
 0x156   :  { %1632 = vmatprep.subr.bf16.mxu1 %v1963_v42 }
 0x158   :  { %1602 = vmatpush3.bf16.msra.mxu0 %v1812_v40 }
 0x159   :  { %1633 = vmatpush3.bf16.msra.mxu1 %v1820_v49 }
 0x1db   :  { %v976_v53 = vpop.f32.mrf.mxu0 }
 0x1dc   :  { %v1017_v54 = vpop.f32.mrf.mxu1  ;;  %v977_v55 = vadd.f32 %v976_v53, %v418_v51 }
 0x1dd   :  { %v978_v56 = vpop.f32.mrf.mxu0 }
 0x1de   :  { %v1019_v57 = vpop.f32.mrf.mxu1  ;;  %v1018_v58 = vadd.f32 %v1017_v54, %v977_v55  ;;  %v979_v59 = vadd.f32 %v978_v56, %v422_v52 }
 0x1df   :  { %v980_v60 = vpop.f32.mrf.mxu0 }
 0x1e0   :  { %v1021_v61 = vpop.f32.mrf.mxu1  ;;  %v1020_v62 = vadd.f32 %v1019_v57, %v979_v59  ;;  %v1104_v63 = vmax.f32 %v1018_v58, 0.0 }
 0x1e1   :  { %v981_v0 = vpop.f32.mrf.mxu0 }
 0x1e2   :  { %v1022_v1 = vpop.f32.mrf.mxu1  ;;  %v1105_v2 = vmax.f32 %v1020_v62, 0.0  ;;  %v1107_v4 = vpack.c.bf16 %v1104_v63, %v1104_v63 }
 0x1e4   :  { %v1108_v3 = vpack.c.bf16 %v1105_v2, %v1105_v2 }
 0x1e6   :  { %1341 = vmatprep.mubr.bf16.mxu0 %v1108_v3 }
 0x1e7   :  { %1342 = vmatmul.mubr.bf16.vlgmr.msra.gmra.mxu0 %v1107_v4 }
 0x1fb   :  { %v1559_v26 = vpop.f32.mrf.mxu0 }
 0x1fc   :  { %v1581_v29 = vpop.f32.mrf.mxu1 }
 0x1fd   :  { %v1560_v6 = vpop.f32.mrf.mxu0 }
 0x1fe   :  { %v1582_v7 = vpop.f32.mrf.mxu1  ;;  %v1561_v8 = vadd.f32 %v1560_v6, %v1559_v26 }
 0x1ff   :  { %v1562_v9 = vpop.f32.mrf.mxu0  ;;  %v1583_v12 = vadd.f32 %v1582_v7, %v1581_v29 }
 0x200   :  { %v1584_v10 = vpop.f32.mrf.mxu1  ;;  %v1059_v11 = vadd.f32 %v1561_v8, %v426_v5 }
 0x201   :  { %v1563_v13 = vpop.f32.mrf.mxu0 }
 0x202   :  { %v1585_v14 = vpop.f32.mrf.mxu1  ;;  %v1099_v15 = vadd.f32 %v1583_v12, %v1059_v11 }
 0x204   :  { %v1106_v16 = vmax.f32 %v1099_v15, 0.0 }
 0x206   :  { %v1109_v17 = vpack.c.bf16 %v1106_v16, %v1106_v16 }
 0x208   :  { %1635 = vmatmul.mubr.bf16.vlgmr.msra.gmra.mxu1 %v1109_v17 }
 0x2a7   :  { %v1603_v18 = vpop.f32.mrf.mxu0 }
 0x2a9   :  { %v1604_v19 = vpop.f32.mrf.mxu0 }
 0x2aa   :  { %v1605_v22 = vadd.f32 %v1604_v19, %v1603_v18 }
 0x2ab   :  { %v1606_v20 = vpop.f32.mrf.mxu0 }
 0x2ac   :  { %v1344_v27 = vadd.f32 %v1605_v22, %v1518_v25 }
 0x2ad   :  { %v1607_v21 = vpop.f32.mrf.mxu0 }
 0x2c8   :  { %v1383_v23 = vpop.f32.mrf.mxu1 }
 0x2c9   :  { %v1384_v24 = vadd.f32 %v1383_v23, %v1344_v27 }
 0x2ca   :  { %v1636_v28 = vpop.f32.mrf.mxu1 }
 0x2cb   :  { %1821 = vtanh.f32 %v1384_v24 }
 0x2cc   :  { %v1386_v30 = vpop.f32.mrf.mxu1 }
 0x2ce   :  { %v1637_v31 = vpop.f32.mrf.mxu1 }
 0x2d8   :  { %v1822_v32 = vpop.eup %1821 }
 0x2d9   :  { %1390 = vst [vmem:[#allocation11] sm:$0xff] %v1822_v32 }
 0x2da   :  { %1934 = shalt.err (!%p1931_p1)
}
 0x2db   :  { %1400 = dma.vmem_to_hbm [thread:$0]  %s1398_s8, 128, %s2063_s7, [#allocation4]  }
 0x2dc   :  { %1949 = dma.done.wait [#allocation4], 128  }
 0x2dd   :  { %1950 = vsyncadd [#allocation4], 4294967168 }
 0x2de   :  { %1404 = vsyncpa [#allocation3], 1 }
 0x2df   :  { %1405 = vsyncpa [#allocation6], 1 }
 0x2e0   :  { %1406 = vsyncpa [#allocation9], 1 }
 0x2e1   :  { %1407 = vsyncpa [#allocation4], 1 }

</bundles_post_ra>
